<compile_context>
chip_gen: v7x
topology: tpu7x:2x2x1
jax: 0.10.0
libtpu: 0.0.40
codegen_flags: <defaults>
</compile_context>

<pallas_src>
import jax
import jax.numpy as jnp
from jax.experimental import pallas as pl
from jax.experimental.pallas import tpu as pltpu


_LANE = 128       # TPU lane width
_SUBLANE = 8      # TPU sublane width (f32)
_HIDDEN = 128     # encoder/decoder hidden width (already lane-aligned)
_CODE = 60        # bottleneck width (padded to 128 inside the kernel)


def _round_up(n, m):
    return ((n + m - 1) // m) * m


def _cdiv(a, b):
    return (a + b - 1) // b


def _pad2d(a, rows, cols):
    r, c = a.shape
    return jnp.pad(a, ((0, rows - r), (0, cols - c)))


# --------------------------------------------------------------------------
# Kernel
# --------------------------------------------------------------------------
def ae_kernel(x_ref, w1_ref, b1_ref, w2_ref, b2_ref,
              w3_ref, b3_ref, w4_ref, b4_ref, out_ref):
    # Weights may be stored in bf16 (v6e/v7x MXU fast path); accumulate in f32
    # and keep all elementwise math in f32 (v5e-safe).
    cdt = w1_ref.dtype
    x = x_ref[...].astype(cdt)

    # encoder hidden: Linear(F -> 128) + relu  (K = raw F, no padding needed)
    h1 = jnp.dot(x, w1_ref[...], preferred_element_type=jnp.float32) + b1_ref[...]
    h1 = jnp.maximum(h1, 0.0)

    # encoder output: Linear(128 -> 128) + sigmoid (cols 60..127 of W2/b2 are
    # zero, so padded code lanes hold sigmoid(0)=0.5 — harmless, see below)
    code = jnp.dot(h1.astype(cdt), w2_ref[...],
                   preferred_element_type=jnp.float32) + b2_ref[...]
    code = jax.nn.sigmoid(code)

    # decoder hidden: Linear(128 -> 128) + relu (rows 60..127 of W3 are zero,
    # so the 0.5-valued padded code lanes contribute nothing downstream)
    h2 = jnp.dot(code.astype(cdt), w3_ref[...],
                 preferred_element_type=jnp.float32) + b3_ref[...]
    h2 = jnp.maximum(h2, 0.0)

    # decoder output: Linear(128 -> F_pad) + sigmoid (padded cols sliced off
    # once in the wrapper; stores are lane-dense)
    y = jnp.dot(h2.astype(cdt), w4_ref[...],
                preferred_element_type=jnp.float32) + b4_ref[...]
    out_ref[...] = jax.nn.sigmoid(y).astype(out_ref.dtype)


# --------------------------------------------------------------------------
# One-time parameter preparation (hoisted out of the per-call forward path)
# --------------------------------------------------------------------------
def prepare_params(params, *, matmul_dtype=jnp.float32):
    """Pad/cast the weights once.  params: w1..w4 as (in, out), b1..b4 as (1, out)."""
    F = params["w1"].shape[0]
    F_pad = _round_up(F, _LANE)
    C_pad = _round_up(_CODE, _LANE)
    wdt = matmul_dtype
    return {
        "F": F, "F_pad": F_pad, "C_pad": C_pad,
        "w1": params["w1"].astype(wdt),                          # (F, 128): raw K
        "b1": params["b1"].astype(jnp.float32),
        "w2": _pad2d(params["w2"], _HIDDEN, C_pad).astype(wdt),  # zero cols -> padded code lanes
        "b2": _pad2d(params["b2"], 1, C_pad).astype(jnp.float32),
        "w3": _pad2d(params["w3"], C_pad, _HIDDEN).astype(wdt),  # zero ROWS kill padded code lanes
        "b3": params["b3"].astype(jnp.float32),
        "w4": _pad2d(params["w4"], _HIDDEN, F_pad).astype(wdt),  # zero cols -> padded outputs
        "b4": _pad2d(params["b4"], 1, F_pad).astype(jnp.float32),
    }


# --------------------------------------------------------------------------
# Forward
# --------------------------------------------------------------------------
def ae_forward(x, prepped, *, batch_tile=512):
    """x: (B, F) float32.  prepped: output of prepare_params()."""
    B, F = x.shape
    assert F == prepped["F"], "x feature dim does not match prepared params"
    F_pad, C_pad = prepped["F_pad"], prepped["C_pad"]

    # Batch tile: whole batch in one grid step when B is small, otherwise
    # `batch_tile`-row tiles (sublane-aligned).  No batch padding — the grid
    # is cdiv(B, bt) and the last (possibly partial) block is masked.
    bt = min(_round_up(batch_tile, _SUBLANE), _round_up(B, _SUBLANE))
    # v7x megacore: once the batch is big enough to matter, make sure the
    # "parallel" grid axis has at least 2 steps so both TensorCores get work.
    if B >= 512 and _cdiv(B, bt) < 2:
        bt = _round_up(_cdiv(B, 2), _SUBLANE)
    num_tiles = _cdiv(B, bt)

    w1, b1 = prepped["w1"], prepped["b1"]
    w2, b2 = prepped["w2"], prepped["b2"]
    w3, b3 = prepped["w3"], prepped["b3"]
    w4, b4 = prepped["w4"], prepped["b4"]

    # Advisory cost estimate (true, unpadded work).
    flops = 2 * B * (F * _HIDDEN + _HIDDEN * _CODE + _CODE * _HIDDEN + _HIDDEN * F)
    transcendentals = B * (_CODE + F)                       # sigmoid exps
    w_itemsize = jnp.dtype(w1.dtype).itemsize
    w_elems = F * _HIDDEN + _HIDDEN * C_pad + C_pad * _HIDDEN + _HIDDEN * F_pad
    bytes_accessed = 2 * B * F * 4 + w_elems * w_itemsize + (2 * _HIDDEN + C_pad + F_pad) * 4
    cost = pl.CostEstimate(flops=flops, transcendentals=transcendentals,
                           bytes_accessed=bytes_accessed)

    # Explicit VMEM budget: double-buffered x/out tiles + weights + biases +
    # f32 intermediates (h1/code/h2/y) with headroom.  Clamped to [32, 64] MiB
    # so it is safe on every generation (v7x physical VMEM is 64 MiB).
    io_bytes = 2 * bt * (F + F_pad) * 4
    tmp_bytes = 2 * bt * (2 * _HIDDEN + C_pad + F_pad) * 4
    vmem_limit = int(max(32 << 20,
                         min(64 << 20,
                             2 * w_elems * w_itemsize + io_bytes + tmp_bytes + (4 << 20))))

    def build_and_run(single_buffer_consts):
        def const(shape):
            # Constant-index weight/bias blocks: single buffer (no rotation,
            # half the VMEM footprint) when supported.
            if single_buffer_consts:
                return pl.BlockSpec(shape, lambda i: (0, 0),
                                    pipeline_mode=pl.Buffered(1))
            return pl.BlockSpec(shape, lambda i: (0, 0))

        return pl.pallas_call(
            ae_kernel,
            out_shape=jax.ShapeDtypeStruct((B, F_pad), x.dtype),
            grid=(num_tiles,),
            in_specs=[
                pl.BlockSpec((bt, F), lambda i: (i, 0)),          # x tile (raw F)
                const(w1.shape), const(b1.shape),
                const(w2.shape), const(b2.shape),
                const(w3.shape), const(b3.shape),
                const(w4.shape), const(b4.shape),
            ],
            out_specs=pl.BlockSpec((bt, F_pad), lambda i: (i, 0)),  # lane-dense output
            compiler_params=pltpu.CompilerParams(
                dimension_semantics=("parallel",),
                vmem_limit_bytes=vmem_limit),
            cost_estimate=cost,
        )(x, w1, b1, w2, b2, w3, b3, w4, b4)

    try:
        out_p = build_and_run(True)
    except Exception:
        # Fallback if this jax build rejects single-buffered (Buffered(1))
        # constant blocks — identical kernel, default double buffering.
        out_p = build_and_run(False)

    return out_p if F_pad == F else out_p[:, :F]


# --------------------------------------------------------------------------
# Param init (PyTorch-default-like) and pure-JAX reference
# --------------------------------------------------------------------------
def init_linear(key, in_features, out_features):
    """Weight returned already transposed to (in, out); bias shaped (1, out)."""
    kw, kb = jax.random.split(key)
    bound = 1.0 / jnp.sqrt(jnp.float32(in_features))
    w = jax.random.uniform(kw, (in_features, out_features), jnp.float32, -bound, bound)
    b = jax.random.uniform(kb, (1, out_features), jnp.float32, -bound, bound)
    return w, b


def make_params(key, input_shape):
    k1, k2, k3, k4 = jax.random.split(key, 4)
    w1, b1 = init_linear(k1, input_shape, _HIDDEN)
    w2, b2 = init_linear(k2, _HIDDEN, _CODE)
    w3, b3 = init_linear(k3, _CODE, _HIDDEN)
    w4, b4 = init_linear(k4, _HIDDEN, input_shape)
    return dict(w1=w1, b1=b1, w2=w2, b2=b2, w3=w3, b3=b3, w4=w4, b4=b4)


def ae_reference(x, p):
    h1 = jnp.maximum(x @ p["w1"] + p["b1"], 0.0)
    code = jax.nn.sigmoid(h1 @ p["w2"] + p["b2"])
    h2 = jnp.maximum(code @ p["w3"] + p["b3"], 0.0)
    return jax.nn.sigmoid(h2 @ p["w4"] + p["b4"])


if __name__ == "__main__":
    key = jax.random.PRNGKey(0)
    k_params, k_x = jax.random.split(key)

    input_shape = 32   # kwargs['input_shape']
    batch = 8

    params = make_params(k_params, input_shape)
    x = jax.random.normal(k_x, (batch, input_shape), jnp.float32)
    ref = jax.block_until_ready(ae_reference(x, params))

    # f32 MXU-operand path: matches the reference tightly.
    prepped = prepare_params(params)                       # one-time prep (hoisted)
    out = jax.block_until_ready(ae_forward(x, prepped))
    assert out.shape == (batch, input_shape)
    assert jnp.allclose(out, ref, atol=1e-5, rtol=1e-5), "f32 mismatch vs reference"

    # bf16 MXU-operand path (v6e/v7x fast path, f32 accumulation): loose tol.
    prepped_bf16 = prepare_params(params, matmul_dtype=jnp.bfloat16)
    out_bf16 = jax.block_until_ready(ae_forward(x, prepped_bf16))
    assert out_bf16.shape == (batch, input_shape)
    assert jnp.allclose(out_bf16, ref, atol=5e-2, rtol=5e-2), "bf16 mismatch vs reference"

    print("KERNEL_OK")
</pallas_src>

<mosaic_0001>
module attributes {stable_mosaic.version = 11 : i64} {
  func.func @ae_kernel(%arg0: i32, %arg1: memref<8x32xf32, #tpu.memory_space<vmem>>, %arg2: memref<32x128xf32, #tpu.memory_space<vmem>>, %arg3: memref<1x128xf32, #tpu.memory_space<vmem>>, %arg4: memref<128x128xf32, #tpu.memory_space<vmem>>, %arg5: memref<1x128xf32, #tpu.memory_space<vmem>>, %arg6: memref<128x128xf32, #tpu.memory_space<vmem>>, %arg7: memref<1x128xf32, #tpu.memory_space<vmem>>, %arg8: memref<128x128xf32, #tpu.memory_space<vmem>>, %arg9: memref<1x128xf32, #tpu.memory_space<vmem>>, %arg10: memref<8x128xf32, #tpu.memory_space<vmem>>) attributes {dimension_semantics = [#tpu.dimension_semantics<parallel>], iteration_bounds = array<i64: 1>, scalar_prefetch = 0 : i64, scratch_operands = 0 : i64, tpu.core_type = #tpu.core_type<tc>, window_params = [{transform_indices = @transform_0, window_bounds = array<i64: 8, 32>}, {pipeline_mode = #tpu.pipeline_mode<synchronous>, transform_indices = @transform_1, window_bounds = array<i64: 32, 128>}, {pipeline_mode = #tpu.pipeline_mode<synchronous>, transform_indices = @transform_2, window_bounds = array<i64: 1, 128>}, {pipeline_mode = #tpu.pipeline_mode<synchronous>, transform_indices = @transform_3, window_bounds = array<i64: 128, 128>}, {pipeline_mode = #tpu.pipeline_mode<synchronous>, transform_indices = @transform_4, window_bounds = array<i64: 1, 128>}, {pipeline_mode = #tpu.pipeline_mode<synchronous>, transform_indices = @transform_5, window_bounds = array<i64: 128, 128>}, {pipeline_mode = #tpu.pipeline_mode<synchronous>, transform_indices = @transform_6, window_bounds = array<i64: 1, 128>}, {pipeline_mode = #tpu.pipeline_mode<synchronous>, transform_indices = @transform_7, window_bounds = array<i64: 128, 128>}, {pipeline_mode = #tpu.pipeline_mode<synchronous>, transform_indices = @transform_8, window_bounds = array<i64: 1, 128>}, {transform_indices = @transform_9, window_bounds = array<i64: 8, 128>}]} {
    %c0 = arith.constant 0 : index
    %c0_0 = arith.constant 0 : index
    %0 = vector.load %arg1[%c0, %c0_0] : memref<8x32xf32, #tpu.memory_space<vmem>>, vector<8x32xf32>
    %c0_1 = arith.constant 0 : index
    %c0_2 = arith.constant 0 : index
    %1 = vector.load %arg2[%c0_1, %c0_2] : memref<32x128xf32, #tpu.memory_space<vmem>>, vector<32x128xf32>
    %cst = arith.constant dense<0.000000e+00> : vector<8x128xf32>
    %2 = tpu.matmul %0, %1, %cst {dimension_numbers = #tpu.dot_dimension_numbers<[1], [0], [0], [1], [0, 0, 1, 1], [], []>} : vector<8x32xf32>, vector<32x128xf32>, vector<8x128xf32> -> vector<8x128xf32>
    %c0_3 = arith.constant 0 : index
    %c0_4 = arith.constant 0 : index
    %3 = vector.load %arg3[%c0_3, %c0_4] : memref<1x128xf32, #tpu.memory_space<vmem>>, vector<1x128xf32>
    %4 = vector.broadcast %3 : vector<1x128xf32> to vector<8x128xf32>
    %5 = arith.addf %2, %4 : vector<8x128xf32>
    %cst_5 = arith.constant 0.000000e+00 : f32
    %6 = vector.broadcast %cst_5 : f32 to vector<8x128xf32>
    %7 = arith.maximumf %5, %6 : vector<8x128xf32>
    %c0_6 = arith.constant 0 : index
    %c0_7 = arith.constant 0 : index
    %8 = vector.load %arg4[%c0_6, %c0_7] : memref<128x128xf32, #tpu.memory_space<vmem>>, vector<128x128xf32>
    %cst_8 = arith.constant dense<0.000000e+00> : vector<8x128xf32>
    %9 = tpu.matmul %7, %8, %cst_8 {dimension_numbers = #tpu.dot_dimension_numbers<[1], [0], [0], [1], [0, 0, 1, 1], [], []>} : vector<8x128xf32>, vector<128x128xf32>, vector<8x128xf32> -> vector<8x128xf32>
    %c0_9 = arith.constant 0 : index
    %c0_10 = arith.constant 0 : index
    %10 = vector.load %arg5[%c0_9, %c0_10] : memref<1x128xf32, #tpu.memory_space<vmem>>, vector<1x128xf32>
    %11 = vector.broadcast %10 : vector<1x128xf32> to vector<8x128xf32>
    %12 = arith.addf %9, %11 : vector<8x128xf32>
    %13 = arith.negf %12 : vector<8x128xf32>
    %14 = math.exp %13 : vector<8x128xf32>
    %cst_11 = arith.constant 1.000000e+00 : f32
    %15 = vector.broadcast %cst_11 : f32 to vector<8x128xf32>
    %16 = arith.addf %15, %14 : vector<8x128xf32>
    %17 = arith.divf %15, %16 : vector<8x128xf32>
    %c0_12 = arith.constant 0 : index
    %c0_13 = arith.constant 0 : index
    %18 = vector.load %arg6[%c0_12, %c0_13] : memref<128x128xf32, #tpu.memory_space<vmem>>, vector<128x128xf32>
    %cst_14 = arith.constant dense<0.000000e+00> : vector<8x128xf32>
    %19 = tpu.matmul %17, %18, %cst_14 {dimension_numbers = #tpu.dot_dimension_numbers<[1], [0], [0], [1], [0, 0, 1, 1], [], []>} : vector<8x128xf32>, vector<128x128xf32>, vector<8x128xf32> -> vector<8x128xf32>
    %c0_15 = arith.constant 0 : index
    %c0_16 = arith.constant 0 : index
    %20 = vector.load %arg7[%c0_15, %c0_16] : memref<1x128xf32, #tpu.memory_space<vmem>>, vector<1x128xf32>
    %21 = vector.broadcast %20 : vector<1x128xf32> to vector<8x128xf32>
    %22 = arith.addf %19, %21 : vector<8x128xf32>
    %cst_17 = arith.constant 0.000000e+00 : f32
    %23 = vector.broadcast %cst_17 : f32 to vector<8x128xf32>
    %24 = arith.maximumf %22, %23 : vector<8x128xf32>
    %c0_18 = arith.constant 0 : index
    %c0_19 = arith.constant 0 : index
    %25 = vector.load %arg8[%c0_18, %c0_19] : memref<128x128xf32, #tpu.memory_space<vmem>>, vector<128x128xf32>
    %cst_20 = arith.constant dense<0.000000e+00> : vector<8x128xf32>
    %26 = tpu.matmul %24, %25, %cst_20 {dimension_numbers = #tpu.dot_dimension_numbers<[1], [0], [0], [1], [0, 0, 1, 1], [], []>} : vector<8x128xf32>, vector<128x128xf32>, vector<8x128xf32> -> vector<8x128xf32>
    %c0_21 = arith.constant 0 : index
    %c0_22 = arith.constant 0 : index
    %27 = vector.load %arg9[%c0_21, %c0_22] : memref<1x128xf32, #tpu.memory_space<vmem>>, vector<1x128xf32>
    %28 = vector.broadcast %27 : vector<1x128xf32> to vector<8x128xf32>
    %29 = arith.addf %26, %28 : vector<8x128xf32>
    %30 = arith.negf %29 : vector<8x128xf32>
    %31 = math.exp %30 : vector<8x128xf32>
    %cst_23 = arith.constant 1.000000e+00 : f32
    %32 = vector.broadcast %cst_23 : f32 to vector<8x128xf32>
    %33 = arith.addf %32, %31 : vector<8x128xf32>
    %34 = arith.divf %32, %33 : vector<8x128xf32>
    %c0_24 = arith.constant 0 : index
    %c0_25 = arith.constant 0 : index
    %35 = vector.load %arg10[%c0_24, %c0_25] : memref<8x128xf32, #tpu.memory_space<vmem>>, vector<8x128xf32>
    tpu.vector_store %arg10[%c0_24, %c0_25], %34 {strides = array<i32>} : memref<8x128xf32, #tpu.memory_space<vmem>>, vector<8x128xf32>,
    return
  }
  func.func @transform_0(%arg0: i32) -> (i32, i32) {
    %c0_i32 = arith.constant 0 : i32
    %c0_i32_0 = arith.constant 0 : i32
    return %arg0, %c0_i32 : i32, i32
  }
  func.func @transform_1(%arg0: i32) -> (i32, i32) {
    %c0_i32 = arith.constant 0 : i32
    %c0_i32_0 = arith.constant 0 : i32
    %c0_i32_1 = arith.constant 0 : i32
    return %c0_i32, %c0_i32_0 : i32, i32
  }
  func.func @transform_2(%arg0: i32) -> (i32, i32) {
    %c0_i32 = arith.constant 0 : i32
    %c0_i32_0 = arith.constant 0 : i32
    %c0_i32_1 = arith.constant 0 : i32
    return %c0_i32, %c0_i32_0 : i32, i32
  }
  func.func @transform_3(%arg0: i32) -> (i32, i32) {
    %c0_i32 = arith.constant 0 : i32
    %c0_i32_0 = arith.constant 0 : i32
    %c0_i32_1 = arith.constant 0 : i32
    return %c0_i32, %c0_i32_0 : i32, i32
  }
  func.func @transform_4(%arg0: i32) -> (i32, i32) {
    %c0_i32 = arith.constant 0 : i32
    %c0_i32_0 = arith.constant 0 : i32
    %c0_i32_1 = arith.constant 0 : i32
    return %c0_i32, %c0_i32_0 : i32, i32
  }
  func.func @transform_5(%arg0: i32) -> (i32, i32) {
    %c0_i32 = arith.constant 0 : i32
    %c0_i32_0 = arith.constant 0 : i32
    %c0_i32_1 = arith.constant 0 : i32
    return %c0_i32, %c0_i32_0 : i32, i32
  }
  func.func @transform_6(%arg0: i32) -> (i32, i32) {
    %c0_i32 = arith.constant 0 : i32
    %c0_i32_0 = arith.constant 0 : i32
    %c0_i32_1 = arith.constant 0 : i32
    return %c0_i32, %c0_i32_0 : i32, i32
  }
  func.func @transform_7(%arg0: i32) -> (i32, i32) {
    %c0_i32 = arith.constant 0 : i32
    %c0_i32_0 = arith.constant 0 : i32
    %c0_i32_1 = arith.constant 0 : i32
    return %c0_i32, %c0_i32_0 : i32, i32
  }
  func.func @transform_8(%arg0: i32) -> (i32, i32) {
    %c0_i32 = arith.constant 0 : i32
    %c0_i32_0 = arith.constant 0 : i32
    %c0_i32_1 = arith.constant 0 : i32
    return %c0_i32, %c0_i32_0 : i32, i32
  }
  func.func @transform_9(%arg0: i32) -> (i32, i32) {
    %c0_i32 = arith.constant 0 : i32
    %c0_i32_0 = arith.constant 0 : i32
    return %arg0, %c0_i32 : i32, i32
  }
}

module attributes {stable_mosaic.version = 11 : i64} {
  func.func @ae_kernel(%arg0: i32, %arg1: memref<8x32xf32, #tpu.memory_space<vmem>>, %arg2: memref<32x128xf32, #tpu.memory_space<vmem>>, %arg3: memref<1x128xf32, #tpu.memory_space<vmem>>, %arg4: memref<128x128xf32, #tpu.memory_space<vmem>>, %arg5: memref<1x128xf32, #tpu.memory_space<vmem>>, %arg6: memref<128x128xf32, #tpu.memory_space<vmem>>, %arg7: memref<1x128xf32, #tpu.memory_space<vmem>>, %arg8: memref<128x128xf32, #tpu.memory_space<vmem>>, %arg9: memref<1x128xf32, #tpu.memory_space<vmem>>, %arg10: memref<8x128xf32, #tpu.memory_space<vmem>>) attributes {dimension_semantics = [#tpu.dimension_semantics<parallel>], iteration_bounds = array<i64: 1>, scalar_prefetch = 0 : i64, scratch_operands = 0 : i64, tpu.core_type = #tpu.core_type<tc>, window_params = [{transform_indices = @transform_0, window_bounds = array<i64: 8, 32>}, {pipeline_mode = #tpu.pipeline_mode<synchronous>, transform_indices = @transform_1, window_bounds = array<i64: 32, 128>}, {pipeline_mode = #tpu.pipeline_mode<synchronous>, transform_indices = @transform_2, window_bounds = array<i64: 1, 128>}, {pipeline_mode = #tpu.pipeline_mode<synchronous>, transform_indices = @transform_3, window_bounds = array<i64: 128, 128>}, {pipeline_mode = #tpu.pipeline_mode<synchronous>, transform_indices = @transform_4, window_bounds = array<i64: 1, 128>}, {pipeline_mode = #tpu.pipeline_mode<synchronous>, transform_indices = @transform_5, window_bounds = array<i64: 128, 128>}, {pipeline_mode = #tpu.pipeline_mode<synchronous>, transform_indices = @transform_6, window_bounds = array<i64: 1, 128>}, {pipeline_mode = #tpu.pipeline_mode<synchronous>, transform_indices = @transform_7, window_bounds = array<i64: 128, 128>}, {pipeline_mode = #tpu.pipeline_mode<synchronous>, transform_indices = @transform_8, window_bounds = array<i64: 1, 128>}, {transform_indices = @transform_9, window_bounds = array<i64: 8, 128>}]} {
    %c0 = arith.constant 0 : index
    %c0_0 = arith.constant 0 : index
    %0 = vector.load %arg1[%c0, %c0_0] : memref<8x32xf32, #tpu.memory_space<vmem>>, vector<8x32xf32>
    %c0_1 = arith.constant 0 : index
    %c0_2 = arith.constant 0 : index
    %1 = vector.load %arg2[%c0_1, %c0_2] : memref<32x128xf32, #tpu.memory_space<vmem>>, vector<32x128xf32>
    %cst = arith.constant dense<0.000000e+00> : vector<8x128xf32>
    %2 = tpu.matmul %0, %1, %cst {dimension_numbers = #tpu.dot_dimension_numbers<[1], [0], [0], [1], [0, 0, 1, 1], [], []>} : vector<8x32xf32>, vector<32x128xf32>, vector<8x128xf32> -> vector<8x128xf32>
    %c0_3 = arith.constant 0 : index
    %c0_4 = arith.constant 0 : index
    %3 = vector.load %arg3[%c0_3, %c0_4] : memref<1x128xf32, #tpu.memory_space<vmem>>, vector<1x128xf32>
    %4 = vector.broadcast %3 : vector<1x128xf32> to vector<8x128xf32>
    %5 = arith.addf %2, %4 : vector<8x128xf32>
    %cst_5 = arith.constant 0.000000e+00 : f32
    %6 = vector.broadcast %cst_5 : f32 to vector<8x128xf32>
    %7 = arith.maximumf %5, %6 : vector<8x128xf32>
    %c0_6 = arith.constant 0 : index
    %c0_7 = arith.constant 0 : index
    %8 = vector.load %arg4[%c0_6, %c0_7] : memref<128x128xf32, #tpu.memory_space<vmem>>, vector<128x128xf32>
    %cst_8 = arith.constant dense<0.000000e+00> : vector<8x128xf32>
    %9 = tpu.matmul %7, %8, %cst_8 {dimension_numbers = #tpu.dot_dimension_numbers<[1], [0], [0], [1], [0, 0, 1, 1], [], []>} : vector<8x128xf32>, vector<128x128xf32>, vector<8x128xf32> -> vector<8x128xf32>
    %c0_9 = arith.constant 0 : index
    %c0_10 = arith.constant 0 : index
    %10 = vector.load %arg5[%c0_9, %c0_10] : memref<1x128xf32, #tpu.memory_space<vmem>>, vector<1x128xf32>
    %11 = vector.broadcast %10 : vector<1x128xf32> to vector<8x128xf32>
    %12 = arith.addf %9, %11 : vector<8x128xf32>
    %13 = arith.negf %12 : vector<8x128xf32>
    %14 = math.exp %13 : vector<8x128xf32>
    %cst_11 = arith.constant 1.000000e+00 : f32
    %15 = vector.broadcast %cst_11 : f32 to vector<8x128xf32>
    %16 = arith.addf %15, %14 : vector<8x128xf32>
    %17 = arith.divf %15, %16 : vector<8x128xf32>
    %c0_12 = arith.constant 0 : index
    %c0_13 = arith.constant 0 : index
    %18 = vector.load %arg6[%c0_12, %c0_13] : memref<128x128xf32, #tpu.memory_space<vmem>>, vector<128x128xf32>
    %cst_14 = arith.constant dense<0.000000e+00> : vector<8x128xf32>
    %19 = tpu.matmul %17, %18, %cst_14 {dimension_numbers = #tpu.dot_dimension_numbers<[1], [0], [0], [1], [0, 0, 1, 1], [], []>} : vector<8x128xf32>, vector<128x128xf32>, vector<8x128xf32> -> vector<8x128xf32>
    %c0_15 = arith.constant 0 : index
    %c0_16 = arith.constant 0 : index
    %20 = vector.load %arg7[%c0_15, %c0_16] : memref<1x128xf32, #tpu.memory_space<vmem>>, vector<1x128xf32>
    %21 = vector.broadcast %20 : vector<1x128xf32> to vector<8x128xf32>
    %22 = arith.addf %19, %21 : vector<8x128xf32>
    %cst_17 = arith.constant 0.000000e+00 : f32
    %23 = vector.broadcast %cst_17 : f32 to vector<8x128xf32>
    %24 = arith.maximumf %22, %23 : vector<8x128xf32>
    %c0_18 = arith.constant 0 : index
    %c0_19 = arith.constant 0 : index
    %25 = vector.load %arg8[%c0_18, %c0_19] : memref<128x128xf32, #tpu.memory_space<vmem>>, vector<128x128xf32>
    %cst_20 = arith.constant dense<0.000000e+00> : vector<8x128xf32>
    %26 = tpu.matmul %24, %25, %cst_20 {dimension_numbers = #tpu.dot_dimension_numbers<[1], [0], [0], [1], [0, 0, 1, 1], [], []>} : vector<8x128xf32>, vector<128x128xf32>, vector<8x128xf32> -> vector<8x128xf32>
    %c0_21 = arith.constant 0 : index
    %c0_22 = arith.constant 0 : index
    %27 = vector.load %arg9[%c0_21, %c0_22] : memref<1x128xf32, #tpu.memory_space<vmem>>, vector<1x128xf32>
    %28 = vector.broadcast %27 : vector<1x128xf32> to vector<8x128xf32>
    %29 = arith.addf %26, %28 : vector<8x128xf32>
    %30 = arith.negf %29 : vector<8x128xf32>
    %31 = math.exp %30 : vector<8x128xf32>
    %cst_23 = arith.constant 1.000000e+00 : f32
    %32 = vector.broadcast %cst_23 : f32 to vector<8x128xf32>
    %33 = arith.addf %32, %31 : vector<8x128xf32>
    %34 = arith.divf %32, %33 : vector<8x128xf32>
    %c0_24 = arith.constant 0 : index
    %c0_25 = arith.constant 0 : index
    %35 = vector.load %arg10[%c0_24, %c0_25] : memref<8x128xf32, #tpu.memory_space<vmem>>, vector<8x128xf32>
    tpu.vector_store %arg10[%c0_24, %c0_25], %34 {strides = array<i32>} : memref<8x128xf32, #tpu.memory_space<vmem>>, vector<8x128xf32>,
    return
  }
  func.func @transform_0(%arg0: i32) -> (i32, i32) {
    %c0_i32 = arith.constant 0 : i32
    %c0_i32_0 = arith.constant 0 : i32
    return %arg0, %c0_i32 : i32, i32
  }
  func.func @transform_1(%arg0: i32) -> (i32, i32) {
    %c0_i32 = arith.constant 0 : i32
    %c0_i32_0 = arith.constant 0 : i32
    %c0_i32_1 = arith.constant 0 : i32
    return %c0_i32, %c0_i32_0 : i32, i32
  }
  func.func @transform_2(%arg0: i32) -> (i32, i32) {
    %c0_i32 = arith.constant 0 : i32
    %c0_i32_0 = arith.constant 0 : i32
    %c0_i32_1 = arith.constant 0 : i32
    return %c0_i32, %c0_i32_0 : i32, i32
  }
  func.func @transform_3(%arg0: i32) -> (i32, i32) {
    %c0_i32 = arith.constant 0 : i32
    %c0_i32_0 = arith.constant 0 : i32
    %c0_i32_1 = arith.constant 0 : i32
    return %c0_i32, %c0_i32_0 : i32, i32
  }
  func.func @transform_4(%arg0: i32) -> (i32, i32) {
    %c0_i32 = arith.constant 0 : i32
    %c0_i32_0 = arith.constant 0 : i32
    %c0_i32_1 = arith.constant 0 : i32
    return %c0_i32, %c0_i32_0 : i32, i32
  }
  func.func @transform_5(%arg0: i32) -> (i32, i32) {
    %c0_i32 = arith.constant 0 : i32
    %c0_i32_0 = arith.constant 0 : i32
    %c0_i32_1 = arith.constant 0 : i32
    return %c0_i32, %c0_i32_0 : i32, i32
  }
  func.func @transform_6(%arg0: i32) -> (i32, i32) {
    %c0_i32 = arith.constant 0 : i32
    %c0_i32_0 = arith.constant 0 : i32
    %c0_i32_1 = arith.constant 0 : i32
    return %c0_i32, %c0_i32_0 : i32, i32
  }
  func.func @transform_7(%arg0: i32) -> (i32, i32) {
    %c0_i32 = arith.constant 0 : i32
    %c0_i32_0 = arith.constant 0 : i32
    %c0_i32_1 = arith.constant 0 : i32
    return %c0_i32, %c0_i32_0 : i32, i32
  }
  func.func @transform_8(%arg0: i32) -> (i32, i32) {
    %c0_i32 = arith.constant 0 : i32
    %c0_i32_0 = arith.constant 0 : i32
    %c0_i32_1 = arith.constant 0 : i32
    return %c0_i32, %c0_i32_0 : i32, i32
  }
  func.func @transform_9(%arg0: i32) -> (i32, i32) {
    %c0_i32 = arith.constant 0 : i32
    %c0_i32_0 = arith.constant 0 : i32
    return %arg0, %c0_i32 : i32, i32
  }
}

</mosaic_0001>

<bundles_post_ra>
// kernel: tpu_custom_call.1
= control target key start
LH: loop header
LB: loop body
LE: loop exit
PB: predicated region body
PF: predicated region fallthrough
CT: control target
= control target key end

     0   :  { %14 = vsyncpa [#allocation3], 0  ;;  %s1103_s0 = inlined_call_operand.hbm [shape: f32[8,32], index: 0, kind: input, shape index: {}]   ;;  %s1104_s1 = inlined_call_operand.hbm [shape: f32[32,128], index: 1, kind: input, shape index: {}]   ;;  %s1105_s2 = inlined_call_operand.vmem [shape: f32[1,128], index: 2, kind: input, shape index: {}]   ;;  %s1106_s3 = inlined_call_operand.hbm [shape: f32[128,128], index: 3, kind: input, shape index: {}]   ;;  %s1107_s4 = inlined_call_operand.vmem [shape: f32[1,128], index: 4, kind: input, shape index: {}]   ;;  %s1108_s5 = inlined_call_operand.hbm [shape: f32[128,128], index: 5, kind: input, shape index: {}]   ;;  %s1109_s6 = inlined_call_operand.vmem [shape: f32[1,128], index: 6, kind: input, shape index: {}]   ;;  %s1110_s7 = inlined_call_operand.hbm [shape: f32[128,128], index: 7, kind: input, shape index: {}]   ;;  %s1111_s8 = inlined_call_operand.vmem [shape: f32[1,128], index: 8, kind: input, shape index: {}]   ;;  %s1112_s9 = inlined_call_operand.hbm [shape: f32[8,128], index: 9, kind: output, shape index: {}]  }
   0x1   :  { %15 = vsyncpa [#allocation6], 0 }
   0x2   :  { %16 = vsyncpa [#allocation9], 0 }
   0x3   :  { %17 = vsyncpa [#allocation4], 0  ;;  %s912_s30 = smov [#allocation5]   ;;  %s772_s13 = scalar_lea.hbm %s1104_s1, 512 }
   0x4   :  { %s33_s10 = sshll.u32 %s912_s30, 4  ;;  %p773_p0 = scmp.ne.s32.totalorder %s1104_s1, %s772_s13  ;;  %s34_s10 = int_to_ptr.vmem [resolvable:$true] %s33_s10 }
   0x5   :  { %p776_p1 = scmp.lt.u32.totalorder %s772_s13, %s1104_s1 }
   0x7   :  { %p778_p2 = pnand %p776_p1, %p773_p0 }
   0x9   :  { %781 = shalt.err (!%p778_p2)
}
   0xa   :  { %s782_s18 = scalar_lea.vmem %s34_s10, 512  ;;  %p787_p4 = scmp.lt.s32.totalorder %s34_s10, %s34_s10 }
   0xb   :  { %p783_p3 = scmp.ne.s32.totalorder %s34_s10, %s782_s18  ;;  %p788_p5 = scmp.lt.s32.totalorder %s782_s18, %s782_s18 }
   0xd   :  { %p789_p6 = por %p788_p5, %p787_p4 }
   0xf   :  { %p790_p7 = pnand %p789_p6, %p783_p3 }
  0x11   :  { %793 = shalt.err (!%p790_p7)
}
  0x12   :  { %s913_s19 = smov 128   ;;  %s914_s20 = smov 8  }
  0x13   :  { %39 = dma.hbm_to_vmem [thread:$0]  %s1104_s1, 512, %s34_s10, [#allocation6], %s913_s19, %s913_s19, %s914_s20  }
  0x14   :  { %s915_s23 = smov [#allocation8]   ;;  %s916_s25 = smov [#allocation2]  }
  0x15   :  { %s61_s24 = sshll.u32 %s915_s23, 4  ;;  %s24_s26 = sshll.u32 %s916_s25, 4  ;;  %s62_s24 = int_to_ptr.vmem [resolvable:$true] %s61_s24  ;;  %s25_s26 = int_to_ptr.vmem [resolvable:$true] %s24_s26 }
  0x16   :  { %s794_s29 = scalar_lea.hbm %s1108_s5, 2048 }
  0x17   :  { %p795_p8 = scmp.ne.s32.totalorder %s1108_s5, %s794_s29  ;;  %p798_p9 = scmp.lt.u32.totalorder %s794_s29, %s1108_s5 }
  0x19   :  { %p800_p10 = pnand %p798_p9, %p795_p8 }
  0x1b   :  { %803 = shalt.err (!%p800_p10)
}
  0x1c   :  { %s804_s1 = scalar_lea.vmem %s62_s24, 2048  ;;  %p809_p12 = scmp.lt.s32.totalorder %s62_s24, %s62_s24 }
  0x1d   :  { %p805_p11 = scmp.ne.s32.totalorder %s62_s24, %s804_s1  ;;  %p810_p13 = scmp.lt.s32.totalorder %s804_s1, %s804_s1 }
  0x1f   :  { %p811_p0 = por %p810_p13, %p809_p12 }
  0x21   :  { %p812_p1 = pnand %p811_p0, %p805_p11 }
  0x23   :  { %815 = shalt.err (!%p812_p1)
}
  0x24   :  { %67 = dma.hbm_to_vmem [thread:$0]  %s1108_s5, 2048, %s62_s24, [#allocation9], %s913_s19, %s913_s19, %s914_s20  }
  0x25   :  { %s816_s17 = scalar_lea.hbm %s1103_s0, 128 }
  0x26   :  { %p817_p2 = scmp.ne.s32.totalorder %s1103_s0, %s816_s17  ;;  %p820_p3 = scmp.lt.u32.totalorder %s816_s17, %s1103_s0 }
  0x28   :  { %p822_p4 = pnand %p820_p3, %p817_p2 }
  0x2a   :  { %825 = shalt.err (!%p822_p4)
}
  0x2b   :  { %s826_s25 = scalar_lea.vmem %s25_s26, 128  ;;  %p831_p6 = scmp.lt.s32.totalorder %s25_s26, %s25_s26 }
  0x2c   :  { %p827_p5 = scmp.ne.s32.totalorder %s25_s26, %s826_s25  ;;  %p832_p7 = scmp.lt.s32.totalorder %s826_s25, %s826_s25 }
  0x2e   :  { %p833_p8 = por %p832_p7, %p831_p6 }
  0x30   :  { %p834_p9 = pnand %p833_p8, %p827_p5 }
  0x32   :  { %837 = shalt.err (!%p834_p9)
}
  0x33   :  { %27 = dma.hbm_to_vmem [thread:$0]  %s1103_s0, 128, %s25_s26, [#allocation3]  }
  0x34   :  { %s917_s27 = smov [#allocation7]   ;;  %s918_s29 = smov [#allocation10]  }
  0x35   :  { %s47_s28 = sshll.u32 %s917_s27, 4  ;;  %s75_s30 = sshll.u32 %s918_s29, 4  ;;  %s48_s28 = int_to_ptr.vmem [resolvable:$true] %s47_s28  ;;  %s76_s30 = int_to_ptr.vmem [resolvable:$true] %s75_s30 }
  0x36   :  { %s838_s13 = scalar_lea.hbm %s1106_s3, 2048 }
  0x37   :  { %p839_p10 = scmp.ne.s32.totalorder %s1106_s3, %s838_s13  ;;  %p842_p11 = scmp.lt.u32.totalorder %s838_s13, %s1106_s3 }
  0x39   :  { %p844_p12 = pnand %p842_p11, %p839_p10 }
  0x3b   :  { %847 = shalt.err (!%p844_p12)
}
  0x3c   :  { %s848_s0 = scalar_lea.vmem %s48_s28, 2048  ;;  %p853_p0 = scmp.lt.s32.totalorder %s48_s28, %s48_s28 }
  0x3d   :  { %p849_p13 = scmp.ne.s32.totalorder %s48_s28, %s848_s0  ;;  %p854_p1 = scmp.lt.s32.totalorder %s848_s0, %s848_s0 }
  0x3f   :  { %p855_p2 = por %p854_p1, %p853_p0 }
  0x41   :  { %p856_p3 = pnand %p855_p2, %p849_p13 }
  0x43   :  { %859 = shalt.err (!%p856_p3)
}
  0x44   :  { %53 = dma.hbm_to_vmem [thread:$0]  %s1106_s3, 2048, %s48_s28, [#allocation6], %s913_s19, %s913_s19, %s914_s20  }
  0x45   :  { %s860_s21 = scalar_lea.hbm %s1110_s7, 2048 }
  0x46   :  { %p861_p4 = scmp.ne.s32.totalorder %s1110_s7, %s860_s21  ;;  %p864_p5 = scmp.lt.u32.totalorder %s860_s21, %s1110_s7 }
  0x48   :  { %p866_p6 = pnand %p864_p5, %p861_p4 }
  0x4a   :  { %869 = shalt.err (!%p866_p6)
}
  0x4b   :  { %s870_s24 = scalar_lea.vmem %s76_s30, 2048  ;;  %p875_p8 = scmp.lt.s32.totalorder %s76_s30, %s76_s30 }
  0x4c   :  { %p871_p7 = scmp.ne.s32.totalorder %s76_s30, %s870_s24  ;;  %p876_p9 = scmp.lt.s32.totalorder %s870_s24, %s870_s24 }
  0x4e   :  { %p877_p10 = por %p876_p9, %p875_p8 }
  0x50   :  { %p878_p11 = pnand %p877_p10, %p871_p7 }
  0x52   :  { %881 = shalt.err (!%p878_p11)
}
  0x53   :  { %81 = dma.hbm_to_vmem [thread:$0]  %s1110_s7, 2048, %s76_s30, [#allocation9], %s913_s19, %s913_s19, %s914_s20  }
  0x54   :  { %904 = dma.done.wait [#allocation3], 128  }
  0x55   :  { %905 = vsyncadd [#allocation3], 4294967168 }
  0x56   :  { %906 = dma.done.wait [#allocation6], 2560  }
  0x57   :  { %907 = vsyncadd [#allocation6], 4294964736 }
  0x58   :  { %908 = dma.done.wait [#allocation9], 4096  }
  0x59   :  { %909 = vsyncadd [#allocation9], 4294963200  ;;  %v919_v0 = vmov 0.0|0.0   ;;  %vm920_vm0 = vmmov 0   ;;  %v921_v1 = vmov 0.0   ;;  %v100_v2 = vld [vmem:[#allocation5] sm:$0xff] }
  0x5a   :  { %675 = vmatprep.subr.bf16.mxu0 %v919_v0  ;;  %567 = vmatprep.mubr.msk.f32.mxu0 %vm920_vm0, %v921_v1  ;;  %v101_v3 = vld [vmem:[#allocation5 + $0x8] sm:$0xff]  ;;  %v102_v4 = vld [vmem:[#allocation5 + $0x10] sm:$0xff]  ;;  %v103_v6 = vld [vmem:[#allocation5 + $0x18] sm:$0xff]  ;;  %vm111_vm1 = vcmask 261120   ;;  %s922_s11 = smov [#allocation11]  }
  0x5b   :  { %681 = vmatprep.subr.bf16.mxu1 %v919_v0  ;;  %602 = vmatprep.mubr.msk.f32.mxu1 %vm920_vm0, %v921_v1  ;;  %v676_v5 = vpack.c.bf16 %v101_v3, %v100_v2  ;;  %v186_v7 = vld [vmem:[#allocation7] sm:$0xff]  ;;  %v187_v8 = vld [vmem:[#allocation7 + $0x8] sm:$0xff]  ;;  %v188_v9 = vld [vmem:[#allocation7 + $0x10] sm:$0xff]  ;;  %v679_v11 = vpack.c.bf16 %v103_v6, %v102_v4  ;;  %s485_s12 = sshll.u32 %s922_s11, 4  ;;  %s486_s12 = int_to_ptr.vmem [resolvable:$true] %s485_s12 }
  0x5c   :  { %v189_v10 = vld [vmem:[#allocation7 + $0x18] sm:$0xff]  ;;  %v682_v12 = vpack.c.bf16 %v187_v8, %v186_v7  ;;  %v190_v14 = vld [vmem:[#allocation7 + $0x20] sm:$0xff]  ;;  %v191_v15 = vld [vmem:[#allocation7 + $0x28] sm:$0xff]  ;;  %p887_p13 = scmp.lt.s32.totalorder %s486_s12, %s486_s12 }
  0x5d   :  { %677 = vmatpush3.bf16.msra.mxu0 %v676_v5  ;;  %v685_v13 = vpack.c.bf16 %v189_v10, %v188_v9  ;;  %v99_v16 = vld [vmem:[#allocation2] sm:$0xff]  ;;  %v688_v17 = vpack.c.bf16 %v191_v15, %v190_v14  ;;  %v192_v18 = vld [vmem:[#allocation7 + $0x30] sm:$0xff]  ;;  %v194_v21 = vld [vmem:[#allocation7 + $0x40] sm:$0xff] }
  0x5e   :  { %678 = vmatprep.subr.bf16.mxu0 %v919_v0  ;;  %683 = vmatpush3.bf16.msra.mxu1 %v682_v12  ;;  %v193_v19 = vld [vmem:[#allocation7 + $0x38] sm:$0xff]  ;;  %v195_v22 = vld [vmem:[#allocation7 + $0x48] sm:$0xff]  ;;  %v196_v24 = vld [vmem:[#allocation7 + $0x50] sm:$0xff] }
  0x5f   :  { %684 = vmatprep.subr.bf16.mxu1 %v919_v0  ;;  %v691_v20 = vpack.c.bf16 %v193_v19, %v192_v18  ;;  %v694_v23 = vpack.c.bf16 %v195_v22, %v194_v21  ;;  %v197_v25 = vld [vmem:[#allocation7 + $0x58] sm:$0xff]  ;;  %v198_v27 = vld [vmem:[#allocation7 + $0x60] sm:$0xff]  ;;  %v199_v28 = vld [vmem:[#allocation7 + $0x68] sm:$0xff] }
  0x60   :  { %v697_v26 = vpack.c.bf16 %v197_v25, %v196_v24  ;;  %v700_v29 = vpack.c.bf16 %v199_v28, %v198_v27  ;;  %v200_v30 = vld [vmem:[#allocation7 + $0x70] sm:$0xff]  ;;  %v201_v31 = vld [vmem:[#allocation7 + $0x78] sm:$0xff]  ;;  %v285_v33 = vld [vmem:[#allocation8] sm:$0xff] }
  0x61   :  { %680 = vmatpush3.bf16.msra.mxu0 %v679_v11  ;;  %v703_v32 = vpack.c.bf16 %v201_v31, %v200_v30  ;;  %v286_v34 = vld [vmem:[#allocation8 + $0x8] sm:$0xff]  ;;  %v496_v36 = vld [vmem:[%s1105_s2] ss:$0 sm:$0xff]  ;;  %v287_v41 = vld [vmem:[#allocation8 + $0x10] sm:$0xff] }
  0x62   :  { %705 = vmatprep.subr.bf16.mxu0 %v919_v0  ;;  %686 = vmatpush3.bf16.msra.mxu1 %v685_v13  ;;  %v706_v35 = vpack.c.bf16 %v286_v34, %v285_v33  ;;  %v288_v42 = vld [vmem:[#allocation8 + $0x18] sm:$0xff]  ;;  %v289_v44 = vld [vmem:[#allocation8 + $0x20] sm:$0xff]  ;;  %v290_v45 = vld [vmem:[#allocation8 + $0x28] sm:$0xff] }
  0x63   :  { %687 = vmatprep.subr.bf16.mxu1 %v919_v0  ;;  %v709_v43 = vpack.c.bf16 %v288_v42, %v287_v41  ;;  %v712_v46 = vpack.c.bf16 %v290_v45, %v289_v44  ;;  %v291_v47 = vld [vmem:[#allocation8 + $0x30] sm:$0xff]  ;;  %v292_v48 = vld [vmem:[#allocation8 + $0x38] sm:$0xff]  ;;  %v293_v50 = vld [vmem:[#allocation8 + $0x40] sm:$0xff] }
  0x64   :  { %568 = vmatmul.mubr.msk.f32.vlgmr.msra.gmra.mrb[0].mxu0 %vm111_vm1, %v99_v16  ;;  %v715_v49 = vpack.c.bf16 %v292_v48, %v291_v47  ;;  %v294_v51 = vld [vmem:[#allocation8 + $0x48] sm:$0xff]  ;;  %v295_v53 = vld [vmem:[#allocation8 + $0x50] sm:$0xff]  ;;  %v296_v54 = vld [vmem:[#allocation8 + $0x58] sm:$0xff] }
  0x65   :  { %637 = vmatprep.mubr.msk.f32.mxu0 %vm920_vm0, %v921_v1  ;;  %707 = vmatpush3.bf16.msra.mxu0 %v706_v35  ;;  %v718_v52 = vpack.c.bf16 %v294_v51, %v293_v50  ;;  %v721_v55 = vpack.c.bf16 %v296_v54, %v295_v53  ;;  %v297_v56 = vld [vmem:[#allocation8 + $0x60] sm:$0xff]  ;;  %v298_v57 = vld [vmem:[#allocation8 + $0x68] sm:$0xff]  ;;  %v299_v59 = vld [vmem:[#allocation8 + $0x70] sm:$0xff] }
  0x66   :  { %689 = vmatpush3.bf16.msra.mxu1 %v688_v17  ;;  %708 = vmatprep.subr.bf16.mxu0 %v919_v0  ;;  %v724_v58 = vpack.c.bf16 %v298_v57, %v297_v56  ;;  %v300_v60 = vld [vmem:[#allocation8 + $0x78] sm:$0xff]  ;;  %v379_v62 = vld [vmem:[#allocation10] sm:$0xff]  ;;  %v380_v63 = vld [vmem:[#allocation10 + $0x8] sm:$0xff] }
  0x67   :  { %690 = vmatprep.subr.bf16.mxu1 %v919_v0  ;;  %v727_v61 = vpack.c.bf16 %v300_v60, %v299_v59  ;;  %v730_v2 = vpack.c.bf16 %v380_v63, %v379_v62  ;;  %v382_v3 = vld [vmem:[#allocation10 + $0x18] sm:$0xff]  ;;  %v383_v5 = vld [vmem:[#allocation10 + $0x20] sm:$0xff]  ;;  %v384_v6 = vld [vmem:[#allocation10 + $0x28] sm:$0xff] }
  0x68   :  { %v736_v7 = vpack.c.bf16 %v384_v6, %v383_v5  ;;  %v385_v8 = vld [vmem:[#allocation10 + $0x30] sm:$0xff]  ;;  %v386_v9 = vld [vmem:[#allocation10 + $0x38] sm:$0xff]  ;;  %v387_v11 = vld [vmem:[#allocation10 + $0x40] sm:$0xff] }
  0x69   :  { %710 = vmatpush3.bf16.msra.mxu0 %v709_v43  ;;  %v739_v10 = vpack.c.bf16 %v386_v9, %v385_v8  ;;  %v388_v12 = vld [vmem:[#allocation10 + $0x48] sm:$0xff]  ;;  %v389_v14 = vld [vmem:[#allocation10 + $0x50] sm:$0xff]  ;;  %v390_v15 = vld [vmem:[#allocation10 + $0x58] sm:$0xff] }
  0x6a   :  { %692 = vmatpush3.bf16.msra.mxu1 %v691_v20  ;;  %711 = vmatprep.subr.bf16.mxu0 %v919_v0  ;;  %v742_v13 = vpack.c.bf16 %v388_v12, %v387_v11  ;;  %v745_v16 = vpack.c.bf16 %v390_v15, %v389_v14  ;;  %v391_v17 = vld [vmem:[#allocation10 + $0x60] sm:$0xff]  ;;  %v392_v18 = vld [vmem:[#allocation10 + $0x68] sm:$0xff]  ;;  %v498_v20 = vld [vmem:[%s1107_s4] ss:$0 sm:$0xff] }
  0x6b   :  { %693 = vmatprep.subr.bf16.mxu1 %v919_v0  ;;  %v748_v19 = vpack.c.bf16 %v392_v18, %v391_v17  ;;  %v393_v28 = vld [vmem:[#allocation10 + $0x70] sm:$0xff]  ;;  %v501_v35 = vld [vmem:[%s1111_s8] ss:$0 sm:$0xff] }
  0x6d   :  { %713 = vmatpush3.bf16.msra.mxu0 %v712_v46 }
  0x6e   :  { %695 = vmatpush3.bf16.msra.mxu1 %v694_v23  ;;  %714 = vmatprep.subr.bf16.mxu0 %v919_v0 }
  0x6f   :  { %696 = vmatprep.subr.bf16.mxu1 %v919_v0 }
  0x71   :  { %716 = vmatpush3.bf16.msra.mxu0 %v715_v49 }
  0x72   :  { %698 = vmatpush3.bf16.msra.mxu1 %v697_v26  ;;  %717 = vmatprep.subr.bf16.mxu0 %v919_v0 }
  0x73   :  { %699 = vmatprep.subr.bf16.mxu1 %v919_v0 }
  0x75   :  { %719 = vmatpush3.bf16.msra.mxu0 %v718_v52 }
  0x76   :  { %701 = vmatpush3.bf16.msra.mxu1 %v700_v29  ;;  %720 = vmatprep.subr.bf16.mxu0 %v919_v0  ;;  %v394_v29 = vld [vmem:[#allocation10 + $0x78] sm:$0xff] }
  0x77   :  { %702 = vmatprep.subr.bf16.mxu1 %v919_v0  ;;  %v751_v30 = vpack.c.bf16 %v394_v29, %v393_v28 }
  0x79   :  { %722 = vmatpush3.bf16.msra.mxu0 %v721_v55 }
  0x7a   :  { %704 = vmatpush3.bf16.msra.mxu1 %v703_v32  ;;  %723 = vmatprep.subr.bf16.mxu0 %v919_v0 }
  0x7b   :  { %729 = vmatprep.subr.bf16.mxu1 %v919_v0 }
  0x7d   :  { %725 = vmatpush3.bf16.msra.mxu0 %v724_v58 }
  0x7e   :  { %726 = vmatprep.subr.bf16.mxu0 %v919_v0 }
  0x81   :  { %728 = vmatpush3.bf16.msra.mxu0 %v727_v61 }
 0x137   :  { %v181_v37 = vpop.f32.mrb[0].mxu0 }
 0x138   :  { %v182_v38 = vadd.f32 %v496_v36, %v181_v37  ;;  %v569_v39 = vpop.f32.mrb[1].mxu0 }
 0x13a   :  { %v185_v40 = vmax.f32 %v182_v38, 0.0 }
 0x13c   :  { %603 = vmatmul.mubr.f32.vlgmr.msra.gmra.mrb[0].mxu1 %v185_v40 }
 0x13d   :  { %672 = vmatprep.mubr.msk.f32.mxu1 %vm920_vm0, %v921_v1  ;;  %v381_v1 = vld [vmem:[#allocation10 + $0x10] sm:$0xff]  ;;  %731 = vmatpush3.bf16.msra.mxu1 %v730_v2 }
 0x13e   :  { %v733_v4 = vpack.c.bf16 %v382_v3, %v381_v1  ;;  %732 = vmatprep.subr.bf16.mxu1 %v919_v0 }
 0x141   :  { %734 = vmatpush3.bf16.msra.mxu1 %v733_v4 }
 0x142   :  { %735 = vmatprep.subr.bf16.mxu1 %v919_v0 }
 0x145   :  { %737 = vmatpush3.bf16.msra.mxu1 %v736_v7 }
 0x146   :  { %738 = vmatprep.subr.bf16.mxu1 %v919_v0 }
 0x149   :  { %740 = vmatpush3.bf16.msra.mxu1 %v739_v10 }
 0x14a   :  { %741 = vmatprep.subr.bf16.mxu1 %v919_v0 }
 0x14d   :  { %743 = vmatpush3.bf16.msra.mxu1 %v742_v13 }
 0x14e   :  { %744 = vmatprep.subr.bf16.mxu1 %v919_v0 }
 0x151   :  { %746 = vmatpush3.bf16.msra.mxu1 %v745_v16 }
 0x152   :  { %747 = vmatprep.subr.bf16.mxu1 %v919_v0 }
 0x155   :  { %749 = vmatpush3.bf16.msra.mxu1 %v748_v19 }
 0x156   :  { %750 = vmatprep.subr.bf16.mxu1 %v919_v0  ;;  %v500_v0 = vld [vmem:[%s1109_s6] ss:$0 sm:$0xff]  ;;  %s882_s6 = scalar_lea.vmem %s486_s12, 128 }
 0x157   :  { %p883_p12 = scmp.ne.s32.totalorder %s486_s12, %s882_s6  ;;  %p888_p0 = scmp.lt.s32.totalorder %s882_s6, %s882_s6 }
 0x159   :  { %752 = vmatpush3.bf16.msra.mxu1 %v751_v30  ;;  %p889_p1 = por %p888_p0, %p887_p13 }
 0x15b   :  { %p890_p2 = pnand %p889_p1, %p883_p12 }
 0x20f   :  { %v275_v21 = vpop.f32.mrb[0].mxu1 }
 0x210   :  { %v276_v22 = vadd.f32 %v498_v20, %v275_v21  ;;  %v604_v23 = vpop.f32.mrb[1].mxu1 }
 0x212   :  { %v499_v24 = vmul.f32 -1.442695, %v276_v22 }
 0x214   :  { %764 = vpow2.f32 %v499_v24 }
 0x21e   :  { %v765_v25 = vpop.eup %764 }
 0x21f   :  { %v282_v26 = vadd.f32 1.0, %v765_v25 }
 0x221   :  { %766 = vrcp.f32 %v282_v26 }
 0x22b   :  { %v767_v27 = vpop.eup %766 }
 0x22c   :  { %638 = vmatmul.mubr.f32.vlgmr.msra.gmra.mrb[2].mxu0 %v767_v27 }
 0x2ff   :  { %v374_v31 = vpop.f32.mrb[2].mxu0 }
 0x300   :  { %v375_v32 = vadd.f32 %v500_v0, %v374_v31  ;;  %v639_v33 = vpop.f32.mrb[3].mxu0 }
 0x302   :  { %v378_v34 = vmax.f32 %v375_v32, 0.0 }
 0x304   :  { %673 = vmatmul.mubr.f32.vlgmr.msra.gmra.mrb[2].mxu1 %v378_v34 }
 0x3d7   :  { %v468_v36 = vpop.f32.mrb[2].mxu1 }
 0x3d8   :  { %v469_v37 = vadd.f32 %v501_v35, %v468_v36  ;;  %v674_v38 = vpop.f32.mrb[3].mxu1 }
 0x3da   :  { %v502_v39 = vmul.f32 -1.442695, %v469_v37 }
 0x3dc   :  { %768 = vpow2.f32 %v502_v39 }
 0x3e6   :  { %v769_v40 = vpop.eup %768 }
 0x3e7   :  { %v475_v41 = vadd.f32 1.0, %v769_v40 }
 0x3e9   :  { %770 = vrcp.f32 %v475_v41 }
 0x3f3   :  { %v771_v42 = vpop.eup %770 }
 0x3f4   :  { %478 = vst [vmem:[#allocation11] sm:$0xff] %v771_v42 }
 0x3f5   :  { %893 = shalt.err (!%p890_p2)
}
 0x3f6   :  { %s894_s1 = scalar_lea.hbm %s1112_s9, 128 }
 0x3f7   :  { %p895_p3 = scmp.ne.s32.totalorder %s1112_s9, %s894_s1  ;;  %p898_p4 = scmp.lt.u32.totalorder %s894_s1, %s1112_s9 }
 0x3f9   :  { %p900_p5 = pnand %p898_p4, %p895_p3 }
 0x3fb   :  { %903 = shalt.err (!%p900_p5)
}
 0x3fc   :  { %488 = dma.vmem_to_hbm [thread:$0]  %s486_s12, 128, %s1112_s9, [#allocation4]  }
 0x3fd   :  { %910 = dma.done.wait [#allocation4], 128  }
 0x3fe   :  { %911 = vsyncadd [#allocation4], 4294967168 }
 0x3ff   :  { %492 = vsyncpa [#allocation3], 1 }
 0x400   :  { %493 = vsyncpa [#allocation6], 1 }
 0x401   :  { %494 = vsyncpa [#allocation9], 1 }
 0x402   :  { %495 = vsyncpa [#allocation4], 1 }

// kernel: tpu_custom_call.1
= control target key start
LH: loop header
LB: loop body
LE: loop exit
PB: predicated region body
PF: predicated region fallthrough
CT: control target
= control target key end

     0   :  { %14 = vsyncpa [#allocation3], 0  ;;  %s1103_s0 = inlined_call_operand.hbm [shape: f32[8,32], index: 0, kind: input, shape index: {}]   ;;  %s1104_s1 = inlined_call_operand.hbm [shape: f32[32,128], index: 1, kind: input, shape index: {}]   ;;  %s1105_s2 = inlined_call_operand.vmem [shape: f32[1,128], index: 2, kind: input, shape index: {}]   ;;  %s1106_s3 = inlined_call_operand.hbm [shape: f32[128,128], index: 3, kind: input, shape index: {}]   ;;  %s1107_s4 = inlined_call_operand.vmem [shape: f32[1,128], index: 4, kind: input, shape index: {}]   ;;  %s1108_s5 = inlined_call_operand.hbm [shape: f32[128,128], index: 5, kind: input, shape index: {}]   ;;  %s1109_s6 = inlined_call_operand.vmem [shape: f32[1,128], index: 6, kind: input, shape index: {}]   ;;  %s1110_s7 = inlined_call_operand.hbm [shape: f32[128,128], index: 7, kind: input, shape index: {}]   ;;  %s1111_s8 = inlined_call_operand.vmem [shape: f32[1,128], index: 8, kind: input, shape index: {}]   ;;  %s1112_s9 = inlined_call_operand.hbm [shape: f32[8,128], index: 9, kind: output, shape index: {}]  }
   0x1   :  { %15 = vsyncpa [#allocation6], 0 }
   0x2   :  { %16 = vsyncpa [#allocation9], 0 }
   0x3   :  { %17 = vsyncpa [#allocation4], 0  ;;  %s912_s30 = smov [#allocation5]   ;;  %s772_s13 = scalar_lea.hbm %s1104_s1, 512 }
   0x4   :  { %s33_s10 = sshll.u32 %s912_s30, 4  ;;  %p773_p0 = scmp.ne.s32.totalorder %s1104_s1, %s772_s13  ;;  %s34_s10 = int_to_ptr.vmem [resolvable:$true] %s33_s10 }
   0x5   :  { %p776_p1 = scmp.lt.u32.totalorder %s772_s13, %s1104_s1 }
   0x7   :  { %p778_p2 = pnand %p776_p1, %p773_p0 }
   0x9   :  { %781 = shalt.err (!%p778_p2)
}
   0xa   :  { %s782_s18 = scalar_lea.vmem %s34_s10, 512  ;;  %p787_p4 = scmp.lt.s32.totalorder %s34_s10, %s34_s10 }
   0xb   :  { %p783_p3 = scmp.ne.s32.totalorder %s34_s10, %s782_s18  ;;  %p788_p5 = scmp.lt.s32.totalorder %s782_s18, %s782_s18 }
   0xd   :  { %p789_p6 = por %p788_p5, %p787_p4 }
   0xf   :  { %p790_p7 = pnand %p789_p6, %p783_p3 }
  0x11   :  { %793 = shalt.err (!%p790_p7)
}
  0x12   :  { %s913_s19 = smov 128   ;;  %s914_s20 = smov 8  }
  0x13   :  { %39 = dma.hbm_to_vmem [thread:$0]  %s1104_s1, 512, %s34_s10, [#allocation6], %s913_s19, %s913_s19, %s914_s20  }
  0x14   :  { %s915_s23 = smov [#allocation8]   ;;  %s916_s25 = smov [#allocation2]  }
  0x15   :  { %s61_s24 = sshll.u32 %s915_s23, 4  ;;  %s24_s26 = sshll.u32 %s916_s25, 4  ;;  %s62_s24 = int_to_ptr.vmem [resolvable:$true] %s61_s24  ;;  %s25_s26 = int_to_ptr.vmem [resolvable:$true] %s24_s26 }
  0x16   :  { %s794_s29 = scalar_lea.hbm %s1108_s5, 2048 }
  0x17   :  { %p795_p8 = scmp.ne.s32.totalorder %s1108_s5, %s794_s29  ;;  %p798_p9 = scmp.lt.u32.totalorder %s794_s29, %s1108_s5 }
  0x19   :  { %p800_p10 = pnand %p798_p9, %p795_p8 }
  0x1b   :  { %803 = shalt.err (!%p800_p10)
}
  0x1c   :  { %s804_s1 = scalar_lea.vmem %s62_s24, 2048  ;;  %p809_p12 = scmp.lt.s32.totalorder %s62_s24, %s62_s24 }
  0x1d   :  { %p805_p11 = scmp.ne.s32.totalorder %s62_s24, %s804_s1  ;;  %p810_p13 = scmp.lt.s32.totalorder %s804_s1, %s804_s1 }
  0x1f   :  { %p811_p0 = por %p810_p13, %p809_p12 }
  0x21   :  { %p812_p1 = pnand %p811_p0, %p805_p11 }
  0x23   :  { %815 = shalt.err (!%p812_p1)
}
  0x24   :  { %67 = dma.hbm_to_vmem [thread:$0]  %s1108_s5, 2048, %s62_s24, [#allocation9], %s913_s19, %s913_s19, %s914_s20  }
  0x25   :  { %s816_s17 = scalar_lea.hbm %s1103_s0, 128 }
  0x26   :  { %p817_p2 = scmp.ne.s32.totalorder %s1103_s0, %s816_s17  ;;  %p820_p3 = scmp.lt.u32.totalorder %s816_s17, %s1103_s0 }
  0x28   :  { %p822_p4 = pnand %p820_p3, %p817_p2 }
  0x2a   :  { %825 = shalt.err (!%p822_p4)
}
  0x2b   :  { %s826_s25 = scalar_lea.vmem %s25_s26, 128  ;;  %p831_p6 = scmp.lt.s32.totalorder %s25_s26, %s25_s26 }
  0x2c   :  { %p827_p5 = scmp.ne.s32.totalorder %s25_s26, %s826_s25  ;;  %p832_p7 = scmp.lt.s32.totalorder %s826_s25, %s826_s25 }
  0x2e   :  { %p833_p8 = por %p832_p7, %p831_p6 }
  0x30   :  { %p834_p9 = pnand %p833_p8, %p827_p5 }
  0x32   :  { %837 = shalt.err (!%p834_p9)
}
  0x33   :  { %27 = dma.hbm_to_vmem [thread:$0]  %s1103_s0, 128, %s25_s26, [#allocation3]  }
  0x34   :  { %s917_s27 = smov [#allocation7]   ;;  %s918_s29 = smov [#allocation10]  }
  0x35   :  { %s47_s28 = sshll.u32 %s917_s27, 4  ;;  %s75_s30 = sshll.u32 %s918_s29, 4  ;;  %s48_s28 = int_to_ptr.vmem [resolvable:$true] %s47_s28  ;;  %s76_s30 = int_to_ptr.vmem [resolvable:$true] %s75_s30 }
  0x36   :  { %s838_s13 = scalar_lea.hbm %s1106_s3, 2048 }
  0x37   :  { %p839_p10 = scmp.ne.s32.totalorder %s1106_s3, %s838_s13  ;;  %p842_p11 = scmp.lt.u32.totalorder %s838_s13, %s1106_s3 }
  0x39   :  { %p844_p12 = pnand %p842_p11, %p839_p10 }
  0x3b   :  { %847 = shalt.err (!%p844_p12)
}
  0x3c   :  { %s848_s0 = scalar_lea.vmem %s48_s28, 2048  ;;  %p853_p0 = scmp.lt.s32.totalorder %s48_s28, %s48_s28 }
  0x3d   :  { %p849_p13 = scmp.ne.s32.totalorder %s48_s28, %s848_s0  ;;  %p854_p1 = scmp.lt.s32.totalorder %s848_s0, %s848_s0 }
  0x3f   :  { %p855_p2 = por %p854_p1, %p853_p0 }
  0x41   :  { %p856_p3 = pnand %p855_p2, %p849_p13 }
  0x43   :  { %859 = shalt.err (!%p856_p3)
}
  0x44   :  { %53 = dma.hbm_to_vmem [thread:$0]  %s1106_s3, 2048, %s48_s28, [#allocation6], %s913_s19, %s913_s19, %s914_s20  }
  0x45   :  { %s860_s21 = scalar_lea.hbm %s1110_s7, 2048 }
  0x46   :  { %p861_p4 = scmp.ne.s32.totalorder %s1110_s7, %s860_s21  ;;  %p864_p5 = scmp.lt.u32.totalorder %s860_s21, %s1110_s7 }
  0x48   :  { %p866_p6 = pnand %p864_p5, %p861_p4 }
  0x4a   :  { %869 = shalt.err (!%p866_p6)
}
  0x4b   :  { %s870_s24 = scalar_lea.vmem %s76_s30, 2048  ;;  %p875_p8 = scmp.lt.s32.totalorder %s76_s30, %s76_s30 }
  0x4c   :  { %p871_p7 = scmp.ne.s32.totalorder %s76_s30, %s870_s24  ;;  %p876_p9 = scmp.lt.s32.totalorder %s870_s24, %s870_s24 }
  0x4e   :  { %p877_p10 = por %p876_p9, %p875_p8 }
  0x50   :  { %p878_p11 = pnand %p877_p10, %p871_p7 }
  0x52   :  { %881 = shalt.err (!%p878_p11)
}
  0x53   :  { %81 = dma.hbm_to_vmem [thread:$0]  %s1110_s7, 2048, %s76_s30, [#allocation9], %s913_s19, %s913_s19, %s914_s20  }
  0x54   :  { %904 = dma.done.wait [#allocation3], 128  }
  0x55   :  { %905 = vsyncadd [#allocation3], 4294967168 }
  0x56   :  { %906 = dma.done.wait [#allocation6], 2560  }
  0x57   :  { %907 = vsyncadd [#allocation6], 4294964736 }
  0x58   :  { %908 = dma.done.wait [#allocation9], 4096  }
  0x59   :  { %909 = vsyncadd [#allocation9], 4294963200  ;;  %v919_v0 = vmov 0.0|0.0   ;;  %vm920_vm0 = vmmov 0   ;;  %v921_v1 = vmov 0.0   ;;  %v100_v2 = vld [vmem:[#allocation5] sm:$0xff] }
  0x5a   :  { %675 = vmatprep.subr.bf16.mxu0 %v919_v0  ;;  %567 = vmatprep.mubr.msk.f32.mxu0 %vm920_vm0, %v921_v1  ;;  %v101_v3 = vld [vmem:[#allocation5 + $0x8] sm:$0xff]  ;;  %v102_v4 = vld [vmem:[#allocation5 + $0x10] sm:$0xff]  ;;  %v103_v6 = vld [vmem:[#allocation5 + $0x18] sm:$0xff]  ;;  %vm111_vm1 = vcmask 261120   ;;  %s922_s11 = smov [#allocation11]  }
  0x5b   :  { %681 = vmatprep.subr.bf16.mxu1 %v919_v0  ;;  %602 = vmatprep.mubr.msk.f32.mxu1 %vm920_vm0, %v921_v1  ;;  %v676_v5 = vpack.c.bf16 %v101_v3, %v100_v2  ;;  %v186_v7 = vld [vmem:[#allocation7] sm:$0xff]  ;;  %v187_v8 = vld [vmem:[#allocation7 + $0x8] sm:$0xff]  ;;  %v188_v9 = vld [vmem:[#allocation7 + $0x10] sm:$0xff]  ;;  %v679_v11 = vpack.c.bf16 %v103_v6, %v102_v4  ;;  %s485_s12 = sshll.u32 %s922_s11, 4  ;;  %s486_s12 = int_to_ptr.vmem [resolvable:$true] %s485_s12 }
  0x5c   :  { %v189_v10 = vld [vmem:[#allocation7 + $0x18] sm:$0xff]  ;;  %v682_v12 = vpack.c.bf16 %v187_v8, %v186_v7  ;;  %v190_v14 = vld [vmem:[#allocation7 + $0x20] sm:$0xff]  ;;  %v191_v15 = vld [vmem:[#allocation7 + $0x28] sm:$0xff]  ;;  %p887_p13 = scmp.lt.s32.totalorder %s486_s12, %s486_s12 }
  0x5d   :  { %677 = vmatpush3.bf16.msra.mxu0 %v676_v5  ;;  %v685_v13 = vpack.c.bf16 %v189_v10, %v188_v9  ;;  %v99_v16 = vld [vmem:[#allocation2] sm:$0xff]  ;;  %v688_v17 = vpack.c.bf16 %v191_v15, %v190_v14  ;;  %v192_v18 = vld [vmem:[#allocation7 + $0x30] sm:$0xff]  ;;  %v194_v21 = vld [vmem:[#allocation7 + $0x40] sm:$0xff] }
  0x5e   :  { %678 = vmatprep.subr.bf16.mxu0 %v919_v0  ;;  %683 = vmatpush3.bf16.msra.mxu1 %v682_v12  ;;  %v193_v19 = vld [vmem:[#allocation7 + $0x38] sm:$0xff]  ;;  %v195_v22 = vld [vmem:[#allocation7 + $0x48] sm:$0xff]  ;;  %v196_v24 = vld [vmem:[#allocation7 + $0x50] sm:$0xff] }
  0x5f   :  { %684 = vmatprep.subr.bf16.mxu1 %v919_v0  ;;  %v691_v20 = vpack.c.bf16 %v193_v19, %v192_v18  ;;  %v694_v23 = vpack.c.bf16 %v195_v22, %v194_v21  ;;  %v197_v25 = vld [vmem:[#allocation7 + $0x58] sm:$0xff]  ;;  %v198_v27 = vld [vmem:[#allocation7 + $0x60] sm:$0xff]  ;;  %v199_v28 = vld [vmem:[#allocation7 + $0x68] sm:$0xff] }
  0x60   :  { %v697_v26 = vpack.c.bf16 %v197_v25, %v196_v24  ;;  %v700_v29 = vpack.c.bf16 %v199_v28, %v198_v27  ;;  %v200_v30 = vld [vmem:[#allocation7 + $0x70] sm:$0xff]  ;;  %v201_v31 = vld [vmem:[#allocation7 + $0x78] sm:$0xff]  ;;  %v285_v33 = vld [vmem:[#allocation8] sm:$0xff] }
  0x61   :  { %680 = vmatpush3.bf16.msra.mxu0 %v679_v11  ;;  %v703_v32 = vpack.c.bf16 %v201_v31, %v200_v30  ;;  %v286_v34 = vld [vmem:[#allocation8 + $0x8] sm:$0xff]  ;;  %v496_v36 = vld [vmem:[%s1105_s2] ss:$0 sm:$0xff]  ;;  %v287_v41 = vld [vmem:[#allocation8 + $0x10] sm:$0xff] }
  0x62   :  { %705 = vmatprep.subr.bf16.mxu0 %v919_v0  ;;  %686 = vmatpush3.bf16.msra.mxu1 %v685_v13  ;;  %v706_v35 = vpack.c.bf16 %v286_v34, %v285_v33  ;;  %v288_v42 = vld [vmem:[#allocation8 + $0x18] sm:$0xff]  ;;  %v289_v44 = vld [vmem:[#allocation8 + $0x20] sm:$0xff]  ;;  %v290_v45 = vld [vmem:[#allocation8 + $0x28] sm:$0xff] }
  0x63   :  { %687 = vmatprep.subr.bf16.mxu1 %v919_v0  ;;  %v709_v43 = vpack.c.bf16 %v288_v42, %v287_v41  ;;  %v712_v46 = vpack.c.bf16 %v290_v45, %v289_v44  ;;  %v291_v47 = vld [vmem:[#allocation8 + $0x30] sm:$0xff]  ;;  %v292_v48 = vld [vmem:[#allocation8 + $0x38] sm:$0xff]  ;;  %v293_v50 = vld [vmem:[#allocation8 + $0x40] sm:$0xff] }
  0x64   :  { %568 = vmatmul.mubr.msk.f32.vlgmr.msra.gmra.mrb[0].mxu0 %vm111_vm1, %v99_v16  ;;  %v715_v49 = vpack.c.bf16 %v292_v48, %v291_v47  ;;  %v294_v51 = vld [vmem:[#allocation8 + $0x48] sm:$0xff]  ;;  %v295_v53 = vld [vmem:[#allocation8 + $0x50] sm:$0xff]  ;;  %v296_v54 = vld [vmem:[#allocation8 + $0x58] sm:$0xff] }
  0x65   :  { %637 = vmatprep.mubr.msk.f32.mxu0 %vm920_vm0, %v921_v1  ;;  %707 = vmatpush3.bf16.msra.mxu0 %v706_v35  ;;  %v718_v52 = vpack.c.bf16 %v294_v51, %v293_v50  ;;  %v721_v55 = vpack.c.bf16 %v296_v54, %v295_v53  ;;  %v297_v56 = vld [vmem:[#allocation8 + $0x60] sm:$0xff]  ;;  %v298_v57 = vld [vmem:[#allocation8 + $0x68] sm:$0xff]  ;;  %v299_v59 = vld [vmem:[#allocation8 + $0x70] sm:$0xff] }
  0x66   :  { %689 = vmatpush3.bf16.msra.mxu1 %v688_v17  ;;  %708 = vmatprep.subr.bf16.mxu0 %v919_v0  ;;  %v724_v58 = vpack.c.bf16 %v298_v57, %v297_v56  ;;  %v300_v60 = vld [vmem:[#allocation8 + $0x78] sm:$0xff]  ;;  %v379_v62 = vld [vmem:[#allocation10] sm:$0xff]  ;;  %v380_v63 = vld [vmem:[#allocation10 + $0x8] sm:$0xff] }
  0x67   :  { %690 = vmatprep.subr.bf16.mxu1 %v919_v0  ;;  %v727_v61 = vpack.c.bf16 %v300_v60, %v299_v59  ;;  %v730_v2 = vpack.c.bf16 %v380_v63, %v379_v62  ;;  %v382_v3 = vld [vmem:[#allocation10 + $0x18] sm:$0xff]  ;;  %v383_v5 = vld [vmem:[#allocation10 + $0x20] sm:$0xff]  ;;  %v384_v6 = vld [vmem:[#allocation10 + $0x28] sm:$0xff] }
  0x68   :  { %v736_v7 = vpack.c.bf16 %v384_v6, %v383_v5  ;;  %v385_v8 = vld [vmem:[#allocation10 + $0x30] sm:$0xff]  ;;  %v386_v9 = vld [vmem:[#allocation10 + $0x38] sm:$0xff]  ;;  %v387_v11 = vld [vmem:[#allocation10 + $0x40] sm:$0xff] }
  0x69   :  { %710 = vmatpush3.bf16.msra.mxu0 %v709_v43  ;;  %v739_v10 = vpack.c.bf16 %v386_v9, %v385_v8  ;;  %v388_v12 = vld [vmem:[#allocation10 + $0x48] sm:$0xff]  ;;  %v389_v14 = vld [vmem:[#allocation10 + $0x50] sm:$0xff]  ;;  %v390_v15 = vld [vmem:[#allocation10 + $0x58] sm:$0xff] }
  0x6a   :  { %692 = vmatpush3.bf16.msra.mxu1 %v691_v20  ;;  %711 = vmatprep.subr.bf16.mxu0 %v919_v0  ;;  %v742_v13 = vpack.c.bf16 %v388_v12, %v387_v11  ;;  %v745_v16 = vpack.c.bf16 %v390_v15, %v389_v14  ;;  %v391_v17 = vld [vmem:[#allocation10 + $0x60] sm:$0xff]  ;;  %v392_v18 = vld [vmem:[#allocation10 + $0x68] sm:$0xff]  ;;  %v498_v20 = vld [vmem:[%s1107_s4] ss:$0 sm:$0xff] }
  0x6b   :  { %693 = vmatprep.subr.bf16.mxu1 %v919_v0  ;;  %v748_v19 = vpack.c.bf16 %v392_v18, %v391_v17  ;;  %v393_v28 = vld [vmem:[#allocation10 + $0x70] sm:$0xff]  ;;  %v501_v35 = vld [vmem:[%s1111_s8] ss:$0 sm:$0xff] }
  0x6d   :  { %713 = vmatpush3.bf16.msra.mxu0 %v712_v46 }
  0x6e   :  { %695 = vmatpush3.bf16.msra.mxu1 %v694_v23  ;;  %714 = vmatprep.subr.bf16.mxu0 %v919_v0 }
  0x6f   :  { %696 = vmatprep.subr.bf16.mxu1 %v919_v0 }
  0x71   :  { %716 = vmatpush3.bf16.msra.mxu0 %v715_v49 }
  0x72   :  { %698 = vmatpush3.bf16.msra.mxu1 %v697_v26  ;;  %717 = vmatprep.subr.bf16.mxu0 %v919_v0 }
  0x73   :  { %699 = vmatprep.subr.bf16.mxu1 %v919_v0 }
  0x75   :  { %719 = vmatpush3.bf16.msra.mxu0 %v718_v52 }
  0x76   :  { %701 = vmatpush3.bf16.msra.mxu1 %v700_v29  ;;  %720 = vmatprep.subr.bf16.mxu0 %v919_v0  ;;  %v394_v29 = vld [vmem:[#allocation10 + $0x78] sm:$0xff] }
  0x77   :  { %702 = vmatprep.subr.bf16.mxu1 %v919_v0  ;;  %v751_v30 = vpack.c.bf16 %v394_v29, %v393_v28 }
  0x79   :  { %722 = vmatpush3.bf16.msra.mxu0 %v721_v55 }
  0x7a   :  { %704 = vmatpush3.bf16.msra.mxu1 %v703_v32  ;;  %723 = vmatprep.subr.bf16.mxu0 %v919_v0 }
  0x7b   :  { %729 = vmatprep.subr.bf16.mxu1 %v919_v0 }
  0x7d   :  { %725 = vmatpush3.bf16.msra.mxu0 %v724_v58 }
  0x7e   :  { %726 = vmatprep.subr.bf16.mxu0 %v919_v0 }
  0x81   :  { %728 = vmatpush3.bf16.msra.mxu0 %v727_v61 }
 0x137   :  { %v181_v37 = vpop.f32.mrb[0].mxu0 }
 0x138   :  { %v182_v38 = vadd.f32 %v496_v36, %v181_v37  ;;  %v569_v39 = vpop.f32.mrb[1].mxu0 }
 0x13a   :  { %v185_v40 = vmax.f32 %v182_v38, 0.0 }
 0x13c   :  { %603 = vmatmul.mubr.f32.vlgmr.msra.gmra.mrb[0].mxu1 %v185_v40 }
 0x13d   :  { %672 = vmatprep.mubr.msk.f32.mxu1 %vm920_vm0, %v921_v1  ;;  %v381_v1 = vld [vmem:[#allocation10 + $0x10] sm:$0xff]  ;;  %731 = vmatpush3.bf16.msra.mxu1 %v730_v2 }
 0x13e   :  { %v733_v4 = vpack.c.bf16 %v382_v3, %v381_v1  ;;  %732 = vmatprep.subr.bf16.mxu1 %v919_v0 }
 0x141   :  { %734 = vmatpush3.bf16.msra.mxu1 %v733_v4 }
 0x142   :  { %735 = vmatprep.subr.bf16.mxu1 %v919_v0 }
 0x145   :  { %737 = vmatpush3.bf16.msra.mxu1 %v736_v7 }
 0x146   :  { %738 = vmatprep.subr.bf16.mxu1 %v919_v0 }
 0x149   :  { %740 = vmatpush3.bf16.msra.mxu1 %v739_v10 }
 0x14a   :  { %741 = vmatprep.subr.bf16.mxu1 %v919_v0 }
 0x14d   :  { %743 = vmatpush3.bf16.msra.mxu1 %v742_v13 }
 0x14e   :  { %744 = vmatprep.subr.bf16.mxu1 %v919_v0 }
 0x151   :  { %746 = vmatpush3.bf16.msra.mxu1 %v745_v16 }
 0x152   :  { %747 = vmatprep.subr.bf16.mxu1 %v919_v0 }
 0x155   :  { %749 = vmatpush3.bf16.msra.mxu1 %v748_v19 }
 0x156   :  { %750 = vmatprep.subr.bf16.mxu1 %v919_v0  ;;  %v500_v0 = vld [vmem:[%s1109_s6] ss:$0 sm:$0xff]  ;;  %s882_s6 = scalar_lea.vmem %s486_s12, 128 }
 0x157   :  { %p883_p12 = scmp.ne.s32.totalorder %s486_s12, %s882_s6  ;;  %p888_p0 = scmp.lt.s32.totalorder %s882_s6, %s882_s6 }
 0x159   :  { %752 = vmatpush3.bf16.msra.mxu1 %v751_v30  ;;  %p889_p1 = por %p888_p0, %p887_p13 }
 0x15b   :  { %p890_p2 = pnand %p889_p1, %p883_p12 }
 0x20f   :  { %v275_v21 = vpop.f32.mrb[0].mxu1 }
 0x210   :  { %v276_v22 = vadd.f32 %v498_v20, %v275_v21  ;;  %v604_v23 = vpop.f32.mrb[1].mxu1 }
 0x212   :  { %v499_v24 = vmul.f32 -1.442695, %v276_v22 }
 0x214   :  { %764 = vpow2.f32 %v499_v24 }
 0x21e   :  { %v765_v25 = vpop.eup %764 }
 0x21f   :  { %v282_v26 = vadd.f32 1.0, %v765_v25 }
 0x221   :  { %766 = vrcp.f32 %v282_v26 }
 0x22b   :  { %v767_v27 = vpop.eup %766 }
 0x22c   :  { %638 = vmatmul.mubr.f32.vlgmr.msra.gmra.mrb[2].mxu0 %v767_v27 }
 0x2ff   :  { %v374_v31 = vpop.f32.mrb[2].mxu0 }
 0x300   :  { %v375_v32 = vadd.f32 %v500_v0, %v374_v31  ;;  %v639_v33 = vpop.f32.mrb[3].mxu0 }
 0x302   :  { %v378_v34 = vmax.f32 %v375_v32, 0.0 }
 0x304   :  { %673 = vmatmul.mubr.f32.vlgmr.msra.gmra.mrb[2].mxu1 %v378_v34 }
 0x3d7   :  { %v468_v36 = vpop.f32.mrb[2].mxu1 }
 0x3d8   :  { %v469_v37 = vadd.f32 %v501_v35, %v468_v36  ;;  %v674_v38 = vpop.f32.mrb[3].mxu1 }
 0x3da   :  { %v502_v39 = vmul.f32 -1.442695, %v469_v37 }
 0x3dc   :  { %768 = vpow2.f32 %v502_v39 }
 0x3e6   :  { %v769_v40 = vpop.eup %768 }
 0x3e7   :  { %v475_v41 = vadd.f32 1.0, %v769_v40 }
 0x3e9   :  { %770 = vrcp.f32 %v475_v41 }
 0x3f3   :  { %v771_v42 = vpop.eup %770 }
 0x3f4   :  { %478 = vst [vmem:[#allocation11] sm:$0xff] %v771_v42 }
 0x3f5   :  { %893 = shalt.err (!%p890_p2)
}
 0x3f6   :  { %s894_s1 = scalar_lea.hbm %s1112_s9, 128 }
 0x3f7   :  { %p895_p3 = scmp.ne.s32.totalorder %s1112_s9, %s894_s1  ;;  %p898_p4 = scmp.lt.u32.totalorder %s894_s1, %s1112_s9 }
 0x3f9   :  { %p900_p5 = pnand %p898_p4, %p895_p3 }
 0x3fb   :  { %903 = shalt.err (!%p900_p5)
}
 0x3fc   :  { %488 = dma.vmem_to_hbm [thread:$0]  %s486_s12, 128, %s1112_s9, [#allocation4]  }
 0x3fd   :  { %910 = dma.done.wait [#allocation4], 128  }
 0x3fe   :  { %911 = vsyncadd [#allocation4], 4294967168 }
 0x3ff   :  { %492 = vsyncpa [#allocation3], 1 }
 0x400   :  { %493 = vsyncpa [#allocation6], 1 }
 0x401   :  { %494 = vsyncpa [#allocation9], 1 }
 0x402   :  { %495 = vsyncpa [#allocation4], 1 }

</bundles_post_ra>
